<compile_context>
chip_gen: v5e
topology: v5e:2x2
jax: 0.10.0
libtpu: 0.0.40
codegen_flags: <defaults>
</compile_context>

<pallas_src>
import functools

import jax
import jax.numpy as jnp
import numpy as np
from jax.experimental import pallas as pl
from jax.experimental.pallas import tpu as pltpu

STATE_SPACE_SIZE = 2
OUT_FEATURES = 1

# Deterministic parameters, exactly as in the PyTorch __init__ (shape [1, 2]).
POLICY_WEIGHT = np.array([[-1.97725234, -0.97624064]], dtype=np.float32)

_LANE = 128        # vreg lane width; one "view row" = 128 batch rows
_SUBLANE = 8       # f32 sublane granule
_R_MAX = 1024      # max view-rows per grid step (~3 MiB double-buffered)
_TARGET_STEPS = 4  # aim for >=4 grid steps (pipelining + v7x 2-TC sharding)


def _cdiv(a: int, b: int) -> int:
    return (a + b - 1) // b


def _round_up(n: int, m: int) -> int:
    return _cdiv(n, m) * m


def _policy_kernel(x_ref, o_ref, *, w0: float, w1: float):
    # x_ref: (2, R, 128) VMEM block -- x_ref[0] / x_ref[1] are the lane-dense
    #        feature planes for 128*R consecutive batch rows.
    # o_ref: (R, 128)  VMEM block  -- lane-dense outputs for the same rows.
    p0 = x_ref[0].astype(jnp.float32)
    p1 = x_ref[1].astype(jnp.float32)
    o_ref[...] = (w0 * p0 + w1 * p1).astype(o_ref.dtype)


def _policy_pallas(planes: jax.Array, n_rows: int, r: int) -> jax.Array:
    """planes: (2, n_rows, 128) -> (n_rows, 128)."""
    itemsize = jnp.dtype(planes.dtype).itemsize
    n_elems = n_rows * _LANE
    kernel = functools.partial(
        _policy_kernel,
        w0=float(POLICY_WEIGHT[0, 0]),
        w1=float(POLICY_WEIGHT[0, 1]),
    )
    return pl.pallas_call(
        kernel,
        out_shape=jax.ShapeDtypeStruct((n_rows, _LANE), planes.dtype),
        grid=(_cdiv(n_rows, r),),
        in_specs=[
            # Leading dim 2 = full extent; last two dims (r, 128) are dense
            # and satisfy the (8, 128) rule (r is a multiple of 8 or the full
            # array extent).  Ragged last block handled by Pallas masking.
            pl.BlockSpec((STATE_SPACE_SIZE, r, _LANE), lambda i: (0, i, 0)),
        ],
        out_specs=pl.BlockSpec((r, _LANE), lambda i: (i, 0)),
        compiler_params=pltpu.CompilerParams(
            dimension_semantics=("parallel",),
        ),
        cost_estimate=pl.CostEstimate(
            flops=3 * n_elems,                       # 2 mul + 1 add per output
            transcendentals=0,
            bytes_accessed=3 * n_elems * itemsize,   # 2 planes in + 1 plane out
        ),
    )(planes)


def _pick_block_rows(n_rows: int) -> int:
    """View-rows per grid step: dense, >= ~4 steps when possible, <= ~3 MiB."""
    if n_rows <= _SUBLANE:
        return n_rows                      # full extent (legal: equals array dim)
    r = _round_up(_cdiv(n_rows, _TARGET_STEPS), _SUBLANE)
    return max(_SUBLANE, min(_R_MAX, r))


@jax.jit
def policy_net_forward(x: jax.Array) -> jax.Array:
    """Pallas equivalent of PolicyNet.forward.  x: [B, 2] -> [B, 1]."""
    batch = x.shape[0]
    assert x.shape[1] == STATE_SPACE_SIZE
    n_rows = _cdiv(max(batch, 1), _LANE)
    b_pad = n_rows * _LANE

    # One fused XLA layout pass: de-interleave the [B, 2] rows into two
    # lane-dense feature planes (transpose + <=127-row pad + free reshape).
    planes = jnp.transpose(x)                                   # (2, B)
    planes = jnp.pad(planes, ((0, 0), (0, b_pad - batch)))      # (2, b_pad)
    planes = planes.reshape(STATE_SPACE_SIZE, n_rows, _LANE)    # (2, n_rows, 128)

    r = _pick_block_rows(n_rows)
    out2d = _policy_pallas(planes, n_rows, r)                   # (n_rows, 128)

    # (n_rows, 128) row-major is bit-identical to (b_pad, 1); dropping the
    # <=127 padded rows is a no-op when batch is already a multiple of 128.
    return out2d.reshape(b_pad, OUT_FEATURES)[:batch]


if __name__ == "__main__":
    w_ref = jnp.asarray(POLICY_WEIGHT)                          # [1, 2]
    key = jax.random.PRNGKey(0)

    # Small, deterministic shapes:
    #   2    -> single tiny tile (lane padding),
    #   257  -> full-extent block (n_rows=3) with padded tail rows,
    #   2200 -> 3 grid steps with a ragged (partial) last block.
    for batch in (2, 257, 2200):
        key, sub = jax.random.split(key)
        x = jax.random.normal(sub, (batch, STATE_SPACE_SIZE), dtype=jnp.float32)
        out = jax.block_until_ready(policy_net_forward(x))
        ref = x @ w_ref.T
        assert out.shape == (batch, OUT_FEATURES)
        assert jnp.allclose(out, ref, atol=1e-5, rtol=1e-5), (
            "max abs err = %g" % float(jnp.max(jnp.abs(out - ref))))

    print("KERNEL_OK")
</pallas_src>

<mosaic_0001>
module attributes {stable_mosaic.version = 11 : i64} {
  func.func @_policy_kernel(%arg0: i32, %arg1: memref<2x1x128xf32, #tpu.memory_space<vmem>>, %arg2: memref<1x128xf32, #tpu.memory_space<vmem>>) attributes {dimension_semantics = [#tpu.dimension_semantics<parallel>], iteration_bounds = array<i64: 1>, scalar_prefetch = 0 : i64, scratch_operands = 0 : i64, tpu.core_type = #tpu.core_type<tc>, window_params = [{transform_indices = @transform_0, window_bounds = array<i64: 2, 1, 128>}, {transform_indices = @transform_1, window_bounds = array<i64: 1, 128>}]} {
    %c0 = arith.constant 0 : index
    %c0_0 = arith.constant 0 : index
    %c0_1 = arith.constant 0 : index
    %0 = vector.load %arg1[%c0, %c0_0, %c0_1] : memref<2x1x128xf32, #tpu.memory_space<vmem>>, vector<1x1x128xf32>
    %1 = vector.shape_cast %0 : vector<1x1x128xf32> to vector<1x128xf32>
    %c1 = arith.constant 1 : index
    %c0_2 = arith.constant 0 : index
    %c0_3 = arith.constant 0 : index
    %2 = vector.load %arg1[%c1, %c0_2, %c0_3] : memref<2x1x128xf32, #tpu.memory_space<vmem>>, vector<1x1x128xf32>
    %3 = vector.shape_cast %2 : vector<1x1x128xf32> to vector<1x128xf32>
    %cst = arith.constant -1.97725236 : f32
    %4 = vector.broadcast %cst : f32 to vector<1x128xf32>
    %5 = arith.mulf %4, %1 : vector<1x128xf32>
    %cst_4 = arith.constant -0.976240634 : f32
    %6 = vector.broadcast %cst_4 : f32 to vector<1x128xf32>
    %7 = arith.mulf %6, %3 : vector<1x128xf32>
    %8 = arith.addf %5, %7 : vector<1x128xf32>
    %c0_5 = arith.constant 0 : index
    %c0_6 = arith.constant 0 : index
    %9 = vector.load %arg2[%c0_5, %c0_6] : memref<1x128xf32, #tpu.memory_space<vmem>>, vector<1x128xf32>
    tpu.vector_store %arg2[%c0_5, %c0_6], %8 {strides = array<i32>} : memref<1x128xf32, #tpu.memory_space<vmem>>, vector<1x128xf32>,
    return
  }
  func.func @transform_0(%arg0: i32) -> (i32, i32, i32) {
    %c0_i32 = arith.constant 0 : i32
    %c0_i32_0 = arith.constant 0 : i32
    %c0_i32_1 = arith.constant 0 : i32
    return %c0_i32, %arg0, %c0_i32_0 : i32, i32, i32
  }
  func.func @transform_1(%arg0: i32) -> (i32, i32) {
    %c0_i32 = arith.constant 0 : i32
    %c0_i32_0 = arith.constant 0 : i32
    return %arg0, %c0_i32 : i32, i32
  }
}

</mosaic_0001>

<bundles_post_ra>
// kernel: policy_net_forward.1
= control target key start
LH: loop header
LB: loop body
LE: loop exit
PB: predicated region body
PF: predicated region fallthrough
CT: control target
= control target key end

     0   :  { %s39_s0 = inlined_call_operand.vmem [shape: f32[2,1,128], index: 0, kind: input, shape index: {}]   ;;  %s40_s1 = inlined_call_operand.vmem [shape: f32[1,128], index: 1, kind: output, shape index: {}]  }
   0x1   :  { %v8_v0 = vld [vmem:[%s39_s0] sm:$0x1]  ;;  %v19_v1 = vld [vmem:[%s39_s0 + $0x1] sm:$0x1] }
   0x2   :  { %v11_v2 = vmul.f32 -1.9772524, %v8_v0  ;;  %v12_v3 = vmul.f32 -0.97624063, %v19_v1 }
   0x4   :  { %v13_v4 = vadd.f32 %v12_v3, %v11_v2 }
   0x6   :  { %14 = vst [vmem:[%s40_s1] sm:$0x1] %v13_v4 }

</bundles_post_ra>
